<compile_context>
chip_gen: v5e
topology: v5e:2x2
jax: 0.10.0
libtpu: 0.0.40
codegen_flags: <defaults>
</compile_context>

<pallas_src>
import jax
import jax.numpy as jnp
from jax.experimental import pallas as pl
from jax.experimental.pallas import tpu as pltpu


def _round_up(x: int, m: int) -> int:
    return (x + m - 1) // m * m


def _pad_to(a, shape):
    """Zero-pad `a` up to `shape` (no-op if already that shape)."""
    if tuple(a.shape) == tuple(shape):
        return a
    return jnp.pad(a, [(0, s - d) for d, s in zip(a.shape, shape)])


def _head_kernel(x_ref, w1_ref, b1_ref, w2_ref, b2_ref, o_ref, acc_ref):
    """One (batch-tile, d_inner-tile) step of  y = tanh(x @ W1 + b1) @ W2 + b2."""
    j = pl.program_id(1)                      # reduction axis over d_inner tiles

    @pl.when(j == 0)
    def _init():
        acc_ref[...] = jnp.zeros_like(acc_ref)

    # dense chunk: [tb, d_in] bf16 @ [d_in, tn] bf16 -> f32 (MXU, f32 accumulate)
    h = jnp.dot(x_ref[...], w1_ref[...], preferred_element_type=jnp.float32)
    h = jnp.tanh(h + b1_ref[...])             # bias add + tanh in f32 (EUP)
    # TODO(synk): pooler_dropout is identity here (eval mode); training-mode
    # dropout would use pltpu.prng_seed + pltpu.stateful_bernoulli.
    # out_proj partial: [tb, tn] @ [tn, n_cls_p] accumulated into f32 scratch.
    acc_ref[...] += jnp.dot(h.astype(w2_ref.dtype), w2_ref[...],
                            preferred_element_type=jnp.float32)

    @pl.when(j == pl.num_programs(1) - 1)
    def _finalize():
        o_ref[...] = (acc_ref[...] + b2_ref[...]).astype(o_ref.dtype)


def classification_head(features, w1, b1, w2, b2, *,
                        inner_block=512, batch_block=256):
    """features: [B, T, d_in] -> logits: [B, num_classes] (f32)."""
    x = features[:, 0, :]                     # CLS token (tiny; stays in JAX)
    B, d_in = x.shape
    d_inner = w1.shape[1]
    n_cls = w2.shape[1]

    # --- tiling -----------------------------------------------------------
    if B > batch_block:
        tb, B_p = batch_block, _round_up(B, batch_block)
    else:
        tb, B_p = B, B
    if d_inner > inner_block:
        tn, d_inner_p = inner_block, _round_up(d_inner, inner_block)
    else:
        tn, d_inner_p = d_inner, d_inner
    n_cls_p = _round_up(n_cls, 128)           # lane-dense output stores

    # --- pad + cast operands (bf16 weights/activations, f32 biases) --------
    xp = _pad_to(x.astype(jnp.bfloat16), (B_p, d_in))
    w1p = _pad_to(w1.astype(jnp.bfloat16), (d_in, d_inner_p))
    b1p = _pad_to(b1.astype(jnp.float32).reshape(1, -1), (1, d_inner_p))
    w2p = _pad_to(w2.astype(jnp.bfloat16), (d_inner_p, n_cls_p))
    b2p = _pad_to(b2.astype(jnp.float32).reshape(1, -1), (1, n_cls_p))

    grid = (B_p // tb, d_inner_p // tn)

    # --- VMEM budget: double-buffered weight tiles + resident x / out / acc
    vmem_bytes = (
        2 * (d_in * tn * 2 + tn * n_cls_p * 2 + 4 * tn + 4 * n_cls_p)
        + 2 * tb * d_in * 2
        + 2 * tb * n_cls_p * 4
        + tb * n_cls_p * 4
    )
    vmem_limit = int(min(max(2 * vmem_bytes, 16 << 20), 64 << 20))

    cost = pl.CostEstimate(
        flops=2 * B_p * (d_in * d_inner_p + d_inner_p * n_cls_p),
        transcendentals=B_p * d_inner_p,
        bytes_accessed=(xp.size * 2 + w1p.size * 2 + w2p.size * 2
                        + b1p.size * 4 + b2p.size * 4 + B_p * n_cls_p * 4),
    )

    out = pl.pallas_call(
        _head_kernel,
        out_shape=jax.ShapeDtypeStruct((B_p, n_cls_p), jnp.float32),
        grid_spec=pltpu.PrefetchScalarGridSpec(
            num_scalar_prefetch=0,
            grid=grid,
            in_specs=[
                pl.BlockSpec((tb, d_in), lambda b, j: (b, 0)),     # x tile
                pl.BlockSpec((d_in, tn), lambda b, j: (0, j)),     # W1 tile
                pl.BlockSpec((1, tn), lambda b, j: (0, j)),        # b1 tile
                pl.BlockSpec((tn, n_cls_p), lambda b, j: (j, 0)),  # W2 tile
                pl.BlockSpec((1, n_cls_p), lambda b, j: (0, 0)),   # b2
            ],
            out_specs=pl.BlockSpec((tb, n_cls_p), lambda b, j: (b, 0)),
            scratch_shapes=[pltpu.VMEM((tb, n_cls_p), jnp.float32)],
        ),
        compiler_params=pltpu.CompilerParams(
            dimension_semantics=("parallel", "arbitrary"),
            vmem_limit_bytes=vmem_limit,
        ),
        cost_estimate=cost,
    )(xp, w1p, b1p, w2p, b2p)

    return out[:B, :n_cls]


def _reference(features, w1, b1, w2, b2):
    """Plain-JAX reference emulating the kernel's bf16-weight / f32-acc math."""
    x = features[:, 0, :]
    xb = x.astype(jnp.bfloat16).astype(jnp.float32)
    w1b = w1.astype(jnp.bfloat16).astype(jnp.float32)
    w2b = w2.astype(jnp.bfloat16).astype(jnp.float32)
    h = jnp.tanh(jnp.dot(xb, w1b, precision=jax.lax.Precision.HIGHEST)
                 + b1.astype(jnp.float32))
    hb = h.astype(jnp.bfloat16).astype(jnp.float32)
    return (jnp.dot(hb, w2b, precision=jax.lax.Precision.HIGHEST)
            + b2.astype(jnp.float32))


if __name__ == "__main__":
    key = jax.random.PRNGKey(0)

    # ---- case 1: small shapes consistent with the module (single-tile grid) --
    B, T, D_IN, D_INNER, N_CLS = 8, 8, 32, 32, 8
    k_feat, k_w1, k_b1, k_w2, k_b2, key = jax.random.split(key, 6)
    features = jax.random.normal(k_feat, (B, T, D_IN), dtype=jnp.float32)
    w1 = jax.random.normal(k_w1, (D_IN, D_INNER), dtype=jnp.float32) * 0.02
    b1 = jax.random.normal(k_b1, (D_INNER,), dtype=jnp.float32) * 0.02
    w2 = jax.random.normal(k_w2, (D_INNER, N_CLS), dtype=jnp.float32) * 0.02
    b2 = jax.random.normal(k_b2, (N_CLS,), dtype=jnp.float32) * 0.02

    logits = classification_head(features, w1, b1, w2, b2)
    jax.block_until_ready(logits)
    assert logits.shape == (B, N_CLS)
    ref = _reference(features, w1, b1, w2, b2)
    assert jnp.allclose(logits, ref, atol=1e-3, rtol=1e-3), "case 1 mismatch"
    ref_f32 = jnp.tanh(features[:, 0, :] @ w1 + b1) @ w2 + b2
    assert jnp.allclose(logits, ref_f32, atol=5e-2), "case 1 f32 drift too large"

    # ---- case 2: exercises batch + d_inner tiling (grid = (2, 2)) ------------
    B2, T2, D_IN2, D_INNER2, N_CLS2 = 16, 4, 64, 256, 10
    k_feat, k_w1, k_b1, k_w2, k_b2, key = jax.random.split(key, 6)
    features2 = jax.random.normal(k_feat, (B2, T2, D_IN2), dtype=jnp.float32)
    w1_2 = jax.random.normal(k_w1, (D_IN2, D_INNER2), dtype=jnp.float32) * 0.02
    b1_2 = jax.random.normal(k_b1, (D_INNER2,), dtype=jnp.float32) * 0.02
    w2_2 = jax.random.normal(k_w2, (D_INNER2, N_CLS2), dtype=jnp.float32) * 0.02
    b2_2 = jax.random.normal(k_b2, (N_CLS2,), dtype=jnp.float32) * 0.02

    logits2 = classification_head(features2, w1_2, b1_2, w2_2, b2_2,
                                  inner_block=128, batch_block=8)
    jax.block_until_ready(logits2)
    assert logits2.shape == (B2, N_CLS2)
    ref2 = _reference(features2, w1_2, b1_2, w2_2, b2_2)
    assert jnp.allclose(logits2, ref2, atol=1e-3, rtol=1e-3), "case 2 mismatch"

    print("KERNEL_OK")
</pallas_src>

<mosaic_0001>
module attributes {stable_mosaic.version = 11 : i64} {
  func.func @_head_kernel(%arg0: i32, %arg1: i32, %arg2: memref<8x32xbf16, #tpu.memory_space<vmem>>, %arg3: memref<32x32xbf16, #tpu.memory_space<vmem>>, %arg4: memref<1x32xf32, #tpu.memory_space<vmem>>, %arg5: memref<32x128xbf16, #tpu.memory_space<vmem>>, %arg6: memref<1x128xf32, #tpu.memory_space<vmem>>, %arg7: memref<8x128xf32, #tpu.memory_space<vmem>>, %arg8: memref<8x128xf32, #tpu.memory_space<vmem>>) attributes {dimension_semantics = [#tpu.dimension_semantics<parallel>, #tpu.dimension_semantics<arbitrary>], iteration_bounds = array<i64: 1, 1>, scalar_prefetch = 0 : i64, scratch_operands = 1 : i64, tpu.core_type = #tpu.core_type<tc>, window_params = [{transform_indices = @transform_0, window_bounds = array<i64: 8, 32>}, {transform_indices = @transform_1, window_bounds = array<i64: 32, 32>}, {transform_indices = @transform_2, window_bounds = array<i64: 1, 32>}, {transform_indices = @transform_3, window_bounds = array<i64: 32, 128>}, {pipeline_mode = #tpu.pipeline_mode<synchronous>, transform_indices = @transform_4, window_bounds = array<i64: 1, 128>}, {transform_indices = @transform_5, window_bounds = array<i64: 8, 128>}]} {
    %c0_i32 = arith.constant 0 : i32
    %0 = arith.cmpi eq, %arg1, %c0_i32 : i32
    %1 = arith.extui %0 : i1 to i32
    %c0_i32_0 = arith.constant 0 : i32
    %2 = arith.cmpi ne, %1, %c0_i32_0 : i32
    scf.if %2 {
      %cst_15 = arith.constant 0.000000e+00 : f32
      %19 = vector.broadcast %cst_15 : f32 to vector<8x128xf32>
      %c0_16 = arith.constant 0 : index
      %c0_17 = arith.constant 0 : index
      %20 = vector.load %arg8[%c0_16, %c0_17] : memref<8x128xf32, #tpu.memory_space<vmem>>, vector<8x128xf32>
      tpu.vector_store %arg8[%c0_16, %c0_17], %19 {strides = array<i32>} : memref<8x128xf32, #tpu.memory_space<vmem>>, vector<8x128xf32>,
    } else {
    }
    %c0 = arith.constant 0 : index
    %c0_1 = arith.constant 0 : index
    %3 = vector.load %arg2[%c0, %c0_1] : memref<8x32xbf16, #tpu.memory_space<vmem>>, vector<8x32xbf16>
    %c0_2 = arith.constant 0 : index
    %c0_3 = arith.constant 0 : index
    %4 = vector.load %arg3[%c0_2, %c0_3] : memref<32x32xbf16, #tpu.memory_space<vmem>>, vector<32x32xbf16>
    %cst = arith.constant dense<0.000000e+00> : vector<8x32xf32>
    %5 = tpu.matmul %3, %4, %cst {dimension_numbers = #tpu.dot_dimension_numbers<[1], [0], [0], [1], [0, 0, 1, 1], [], []>} : vector<8x32xbf16>, vector<32x32xbf16>, vector<8x32xf32> -> vector<8x32xf32>
    %c0_4 = arith.constant 0 : index
    %c0_5 = arith.constant 0 : index
    %6 = vector.load %arg4[%c0_4, %c0_5] : memref<1x32xf32, #tpu.memory_space<vmem>>, vector<1x32xf32>
    %7 = vector.broadcast %6 : vector<1x32xf32> to vector<8x32xf32>
    %8 = arith.addf %5, %7 : vector<8x32xf32>
    %9 = math.tanh %8 : vector<8x32xf32>
    %c0_6 = arith.constant 0 : index
    %c0_7 = arith.constant 0 : index
    %10 = vector.load %arg8[%c0_6, %c0_7] : memref<8x128xf32, #tpu.memory_space<vmem>>, vector<8x128xf32>
    %11 = arith.truncf %9 : vector<8x32xf32> to vector<8x32xbf16>
    %c0_8 = arith.constant 0 : index
    %c0_9 = arith.constant 0 : index
    %12 = vector.load %arg5[%c0_8, %c0_9] : memref<32x128xbf16, #tpu.memory_space<vmem>>, vector<32x128xbf16>
    %cst_10 = arith.constant dense<0.000000e+00> : vector<8x128xf32>
    %13 = tpu.matmul %11, %12, %cst_10 {dimension_numbers = #tpu.dot_dimension_numbers<[1], [0], [0], [1], [0, 0, 1, 1], [], []>} : vector<8x32xbf16>, vector<32x128xbf16>, vector<8x128xf32> -> vector<8x128xf32>
    %14 = arith.addf %10, %13 : vector<8x128xf32>
    %c0_11 = arith.constant 0 : index
    %c0_12 = arith.constant 0 : index
    %15 = vector.load %arg8[%c0_11, %c0_12] : memref<8x128xf32, #tpu.memory_space<vmem>>, vector<8x128xf32>
    tpu.vector_store %arg8[%c0_11, %c0_12], %14 {strides = array<i32>} : memref<8x128xf32, #tpu.memory_space<vmem>>, vector<8x128xf32>,
    %c0_i32_13 = arith.constant 0 : i32
    %16 = arith.cmpi eq, %arg1, %c0_i32_13 : i32
    %17 = arith.extui %16 : i1 to i32
    %c0_i32_14 = arith.constant 0 : i32
    %18 = arith.cmpi ne, %17, %c0_i32_14 : i32
    scf.if %18 {
      %c0_15 = arith.constant 0 : index
      %c0_16 = arith.constant 0 : index
      %19 = vector.load %arg8[%c0_15, %c0_16] : memref<8x128xf32, #tpu.memory_space<vmem>>, vector<8x128xf32>
      %c0_17 = arith.constant 0 : index
      %c0_18 = arith.constant 0 : index
      %20 = vector.load %arg6[%c0_17, %c0_18] : memref<1x128xf32, #tpu.memory_space<vmem>>, vector<1x128xf32>
      %21 = vector.broadcast %20 : vector<1x128xf32> to vector<8x128xf32>
      %22 = arith.addf %19, %21 : vector<8x128xf32>
      %c0_19 = arith.constant 0 : index
      %c0_20 = arith.constant 0 : index
      %23 = vector.load %arg7[%c0_19, %c0_20] : memref<8x128xf32, #tpu.memory_space<vmem>>, vector<8x128xf32>
      tpu.vector_store %arg7[%c0_19, %c0_20], %22 {strides = array<i32>} : memref<8x128xf32, #tpu.memory_space<vmem>>, vector<8x128xf32>,
    } else {
    }
    return
  }
  func.func @transform_0(%arg0: i32, %arg1: i32) -> (i32, i32) {
    %c0_i32 = arith.constant 0 : i32
    %c0_i32_0 = arith.constant 0 : i32
    return %arg0, %c0_i32 : i32, i32
  }
  func.func @transform_1(%arg0: i32, %arg1: i32) -> (i32, i32) {
    %c0_i32 = arith.constant 0 : i32
    %c0_i32_0 = arith.constant 0 : i32
    return %c0_i32, %arg1 : i32, i32
  }
  func.func @transform_2(%arg0: i32, %arg1: i32) -> (i32, i32) {
    %c0_i32 = arith.constant 0 : i32
    %c0_i32_0 = arith.constant 0 : i32
    return %c0_i32, %arg1 : i32, i32
  }
  func.func @transform_3(%arg0: i32, %arg1: i32) -> (i32, i32) {
    %c0_i32 = arith.constant 0 : i32
    %c0_i32_0 = arith.constant 0 : i32
    return %arg1, %c0_i32 : i32, i32
  }
  func.func @transform_4(%arg0: i32, %arg1: i32) -> (i32, i32) {
    %c0_i32 = arith.constant 0 : i32
    %c0_i32_0 = arith.constant 0 : i32
    %c0_i32_1 = arith.constant 0 : i32
    return %c0_i32, %c0_i32_0 : i32, i32
  }
  func.func @transform_5(%arg0: i32, %arg1: i32) -> (i32, i32) {
    %c0_i32 = arith.constant 0 : i32
    %c0_i32_0 = arith.constant 0 : i32
    return %arg0, %c0_i32 : i32, i32
  }
}

</mosaic_0001>

<bundles_post_ra>
// kernel: tpu_custom_call.1
= control target key start
LH: loop header
LB: loop body
LE: loop exit
PB: predicated region body
PF: predicated region fallthrough
CT: control target
= control target key end

     0   :  { %10 = vsyncpa [#allocation4], 0  ;;  %s363_s0 = inlined_call_operand.hbm [shape: bf16[8,32], index: 0, kind: input, shape index: {}]   ;;  %s364_s1 = inlined_call_operand.hbm [shape: bf16[32,32], index: 1, kind: input, shape index: {}]   ;;  %s365_s2 = inlined_call_operand.vmem [shape: f32[1,32], index: 2, kind: input, shape index: {}]   ;;  %s366_s3 = inlined_call_operand.hbm [shape: bf16[32,128], index: 3, kind: input, shape index: {}]   ;;  %s367_s4 = inlined_call_operand.vmem [shape: f32[1,128], index: 4, kind: input, shape index: {}]   ;;  %s368_s5 = inlined_call_operand.hbm [shape: f32[8,128], index: 5, kind: output, shape index: {}]  }
   0x1   :  { %11 = vsyncpa [#allocation7], 0  ;;  %s28_s20 = sshll.u32 %s364_s1, 4  ;;  %s29_s20 = int_to_ptr.hbm [resolvable:$true] %s28_s20 }
   0x2   :  { %12 = vsyncpa [#allocation5], 0  ;;  %s309_s21 = smov [#allocation6]   ;;  %s18_s25 = sshll.u32 %s363_s0, 4  ;;  %s19_s25 = int_to_ptr.hbm [resolvable:$true] %s18_s25 }
   0x3   :  { %s30_s22 = sshll.u32 %s309_s21, 4  ;;  %s310_s26 = smov 64   ;;  %s31_s22 = int_to_ptr.vmem [resolvable:$true] %s30_s22 }
   0x4   :  { %s311_s27 = smov 4   ;;  %s312_s28 = smov [#allocation3]  }
   0x5   :  { %36 = dma.hbm_to_vmem [thread:$0]  %s29_s20, 256, %s31_s22, [#allocation7], %s310_s26, %s310_s26, %s311_s27  }
   0x6   :  { %s20_s29 = sshll.u32 %s312_s28, 4  ;;  %s43_s7 = sshll.u32 %s366_s3, 4  ;;  %s21_s29 = int_to_ptr.vmem [resolvable:$true] %s20_s29  ;;  %s44_s7 = int_to_ptr.hbm [resolvable:$true] %s43_s7 }
   0x7   :  { %23 = dma.hbm_to_vmem [thread:$0]  %s19_s25, 64, %s21_s29, [#allocation4]  }
   0x8   :  { %s313_s1 = smov [#allocation8]  }
   0x9   :  { %s45_s8 = sshll.u32 %s313_s1, 4  ;;  %s46_s8 = int_to_ptr.vmem [resolvable:$true] %s45_s8 }
   0xa   :  { %51 = dma.hbm_to_vmem [thread:$0]  %s44_s7, 256, %s46_s8, [#allocation7], %s310_s26, %s310_s26, %s311_s27  }
   0xb   :  { %303 = dma.done.wait [#allocation4], 64  }
   0xc   :  { %304 = vsyncadd [#allocation4], 4294967232 }
   0xd   :  { %305 = dma.done.wait [#allocation7], 512  }
   0xe   :  { %306 = vsyncadd [#allocation7], 4294966784  ;;  %v194_v0 = vld [vmem:[#allocation6 + $0x8] sm:$0xff]  ;;  %v193_v1 = vld [vmem:[#allocation6] sm:$0xff]  ;;  %vm93_vm0 = vcmask 261120   ;;  %s314_s11 = smov [#allocation9]  }
   0xf   :  { %103 = vmatpush.bf16.msra.mxu0 %v194_v0  ;;  %v72_v2 = vld [vmem:[#allocation3] sm:$0xf]  ;;  %v195_v4 = vld [vmem:[#allocation8] sm:$0xff]  ;;  %s162_s12 = sshll.u32 %s314_s11, 4  ;;  %s164_s15 = sshll.u32 %s368_s5, 4  ;;  %s163_s12 = int_to_ptr.vmem [resolvable:$true] %s162_s12  ;;  %s165_s15 = int_to_ptr.hbm [resolvable:$true] %s164_s15 }
  0x10   :  { %v196_v3 = vld [vmem:[#allocation8 + $0x8] sm:$0xff] }
  0x11   :  { %138 = vmatpush.bf16.msra.mxu1 %v196_v3  ;;  %v203_v5 = vld [vmem:[%s365_s2] ss:$0 sm:$0xff] }
  0x12   :  { %v204_v11 = vld [vmem:[%s367_s4] ss:$0 sm:$0xff] }
  0x13   :  { %104 = vmatpush.bf16.msra.mxu0 %v193_v1 }
  0x15   :  { %139 = vmatpush.bf16.msra.mxu1 %v195_v4 }
  0x16   :  { %183 = vmatmul.msk.bf16.vlgmr.msra.gmra.mxu0 %vm93_vm0, %v72_v2 }
  0x93   :  { %v106_v6 = vpop.f32.mrf.mxu0 }
  0x94   :  { %v107_v7 = vadd.f32 %v203_v5, %v106_v6 }
  0x96   :  { %205 = vtanh.f32 %v107_v7 }
  0x9b   :  { %v108_v8 = vpop.f32.mrf.mxu0 }
  0x9c   :  { %v206_v9 = vpop.eup %205 }
  0x9d   :  { %v112_v10 = vpack.c.bf16 %v206_v9, %v206_v9 }
  0x9f   :  { %192 = vmatmul.msk.bf16.vlgmr.msra.gmra.mxu1 %vm93_vm0, %v112_v10 }
 0x11c   :  { %v141_v12 = vpop.f32.mrf.mxu1 }
 0x11d   :  { %v155_v13 = vadd.f32 %v204_v11, %v141_v12 }
 0x11f   :  { %156 = vst [vmem:[#allocation9] sm:$0xff] %v155_v13 }
 0x120   :  { %167 = dma.vmem_to_hbm [thread:$0]  %s163_s12, 128, %s165_s15, [#allocation5]  }
 0x124   :  { %v143_v14 = vpop.f32.mrf.mxu1 }
 0x125   :  { %307 = dma.done.wait [#allocation5], 128  }
 0x126   :  { %308 = vsyncadd [#allocation5], 4294967168 }
 0x127   :  { %172 = vsyncpa [#allocation4], 1 }
 0x128   :  { %173 = vsyncpa [#allocation7], 1 }
 0x129   :  { %174 = vsyncpa [#allocation5], 1 }

</bundles_post_ra>
